<compile_context>
chip_gen: v5e
topology: v5e:2x2
jax: 0.10.0
libtpu: 0.0.40
codegen_flags: <defaults>
</compile_context>

<pallas_src>
import jax
import jax.numpy as jnp
from jax.experimental import pallas as pl
from jax.experimental.pallas import tpu as pltpu


def _round_up(a, b):
    return ((a + b - 1) // b) * b


def _gather_kernel(ids_ref, table_ref, out_ref, copy_sems):
    # ids_ref   : (n_pad,)   int32  SMEM (scalar prefetch)
    # table_ref : (V, D)     f32    HBM (pl.ANY) raw ref; rows DMA-gathered
    # out_ref   : (tile, D)  f32    VMEM output block (written only by DMA)
    # copy_sems : (nbuf,)    DMA semaphores — nbuf outstanding row copies
    tile = out_ref.shape[0]
    V = table_ref.shape[0]
    nbuf = copy_sems.shape[0]
    base = pl.program_id(0) * tile

    def start_row(t):
        row = ids_ref[base + t]
        # nn.Embedding requires ids in [0, V); clamp so a bad id cannot make the
        # DMA read arbitrary HBM (TPU DMAs have no hardware bounds check).
        row = jnp.clip(row, 0, V - 1)
        pltpu.make_async_copy(
            table_ref.at[pl.ds(row, 1), :],
            out_ref.at[pl.ds(t, 1), :],
            copy_sems.at[t % nbuf],
        ).start()

    def wait_row(t):
        # Same-size descriptor (row index is irrelevant for the wait).
        pltpu.make_async_copy(
            table_ref.at[pl.ds(0, 1), :],
            out_ref.at[pl.ds(t, 1), :],
            copy_sems.at[t % nbuf],
        ).wait()

    # Prime nbuf outstanding row DMAs.
    @pl.loop(0, nbuf)
    def _(t):
        start_row(t)

    # Steady state: retire the oldest in-flight row, issue the next one.
    @pl.loop(nbuf, tile)
    def _(t):
        wait_row(t - nbuf)
        start_row(t)

    # Drain the ring.
    @pl.loop(tile - nbuf, tile)
    def _(t):
        wait_row(t)

    # TODO(synk): training-mode dropout (pltpu.prng_seed + pltpu.prng_random_bits
    # mask) is not implemented; this matches eval() where nn.Dropout is identity.


def word_embedding(x, table, *, tile=256, n_outstanding=8):
    """x: (B, S) integer token ids in [0, ntoken]; table: (ntoken + 1, D) f32."""
    B, S = x.shape
    V, D = table.shape
    n_tok = B * S

    # Large token tile amortises per-grid-step overhead (256; 512-1024 also fine
    # — VMEM use is only the (tile, D) output block). Shrink for tiny inputs so
    # we don't gather padding rows needlessly.
    tile = min(tile, _round_up(n_tok, 8))
    n_pad = _round_up(n_tok, tile)
    n_tiles = n_pad // tile
    nbuf = min(n_outstanding, tile)

    ids = x.reshape(n_tok).astype(jnp.int32)
    if n_pad != n_tok:
        # Pad with the padding index (last, all-zero row); sliced off below.
        pad = jnp.full((n_pad - n_tok,), V - 1, dtype=jnp.int32)
        ids = jnp.concatenate([ids, pad])

    out = pl.pallas_call(
        _gather_kernel,
        out_shape=jax.ShapeDtypeStruct((n_pad, D), table.dtype),
        grid_spec=pltpu.PrefetchScalarGridSpec(
            num_scalar_prefetch=1,                      # ids -> SMEM
            grid=(n_tiles,),
            in_specs=[pl.BlockSpec(memory_space=pl.ANY)],   # table stays in HBM
            out_specs=pl.BlockSpec((tile, D), lambda i, ids: (i, 0)),
            scratch_shapes=[pltpu.SemaphoreType.DMA((nbuf,))],
        ),
        compiler_params=pltpu.CompilerParams(
            dimension_semantics=("parallel",)),
    )(ids, table)

    return out[:n_tok].reshape(B, S, D)


def make_embedding_table(key, ntoken, emb_dim):
    # Matches nn.Embedding(ntoken + 1, emb_dim, padding_idx=ntoken):
    # N(0, 1) weights with the padding row zeroed.
    w = jax.random.normal(key, (ntoken + 1, emb_dim), dtype=jnp.float32)
    w = w.at[ntoken].set(0.0)
    return w


if __name__ == "__main__":
    ntoken, emb_dim, dropout = 100, 32, 0.1
    B, S = 2, 8

    key = jax.random.PRNGKey(0)
    k_tab, k_ids, k_ids2 = jax.random.split(key, 3)

    table = make_embedding_table(k_tab, ntoken, emb_dim)
    # Token ids in [0, ntoken] inclusive (ntoken == padding index).
    x = jax.random.randint(k_ids, (B, S), 0, ntoken + 1, dtype=jnp.int32)

    out = jax.block_until_ready(word_embedding(x, table))
    ref = table[x]                      # plain JAX gather + identity dropout
    assert out.shape == (B, S, emb_dim)
    assert jnp.allclose(out, ref), "mismatch vs reference gather"

    # Ragged-tail path: B*S not a multiple of the token tile.
    x2 = jax.random.randint(k_ids2, (3, 7), 0, ntoken + 1, dtype=jnp.int32)
    out2 = jax.block_until_ready(word_embedding(x2, table))
    assert jnp.allclose(out2, table[x2]), "mismatch (ragged) vs reference"

    print("KERNEL_OK")
</pallas_src>

<mosaic_0001>
module attributes {stable_mosaic.version = 11 : i64} {
  func.func @_gather_kernel(%arg0: i32, %arg1: memref<16xi32, #tpu.memory_space<smem>>, %arg2: memref<101x32xf32, #tpu.memory_space<any>>, %arg3: memref<16x32xf32, #tpu.memory_space<vmem>>, %arg4: memref<8x!tpu.dma_semaphore, #tpu.memory_space<semaphore_mem>>) attributes {dimension_semantics = [#tpu.dimension_semantics<parallel>], iteration_bounds = array<i64: 1>, scalar_prefetch = 1 : i64, scratch_operands = 1 : i64, tpu.core_type = #tpu.core_type<tc>, window_params = [{}, {transform_indices = @transform_1, window_bounds = array<i64: 16, 32>}]} {
    %c16_i32 = arith.constant 16 : i32
    %0 = arith.muli %arg0, %c16_i32 : i32
    %c0_i32 = arith.constant 0 : i32
    %c8_i32 = arith.constant 8 : i32
    %1 = arith.addi %c0_i32, %c8_i32 : i32
    %c1_i32 = arith.constant 1 : i32
    scf.for %arg5 = %c0_i32 to %1 step %c1_i32  : i32 {
      %c1_i32_9 = arith.constant 1 : i32
      %4 = arith.muli %arg5, %c1_i32_9 : i32
      %c0_i32_10 = arith.constant 0 : i32
      %5 = arith.addi %c0_i32_10, %4 : i32
      %6 = arith.addi %0, %5 : i32
      %7 = arith.index_cast %6 : i32 to index
      %8 = memref.load %arg1[%7] : memref<16xi32, #tpu.memory_space<smem>>
      %c0_i32_11 = arith.constant 0 : i32
      %c100_i32 = arith.constant 100 : i32
      %9 = arith.maxsi %c0_i32_11, %8 : i32
      %10 = arith.minsi %c100_i32, %9 : i32
      %c8_i32_12 = arith.constant 8 : i32
      %c0_i32_13 = arith.constant 0 : i32
      %11 = arith.cmpi eq, %c8_i32_12, %c0_i32_13 : i32
      %c1_i32_14 = arith.constant 1 : i32
      %12 = arith.select %11, %c1_i32_14, %c8_i32_12 : i32
      %13 = arith.remsi %5, %12 : i32
      %c0_i32_15 = arith.constant 0 : i32
      %14 = arith.cmpi ne, %13, %c0_i32_15 : i32
      %c0_i32_16 = arith.constant 0 : i32
      %15 = arith.cmpi slt, %13, %c0_i32_16 : i32
      %c0_i32_17 = arith.constant 0 : i32
      %16 = arith.cmpi slt, %12, %c0_i32_17 : i32
      %17 = arith.xori %15, %16 : i1
      %18 = arith.andi %17, %14 : i1
      %19 = arith.addi %13, %12 : i32
      %20 = arith.select %18, %19, %13 : i32
      %c0_i32_18 = arith.constant 0 : i32
      %21 = tpu.memref_slice %arg2[%10, %c0_i32_18] : memref<101x32xf32, #tpu.memory_space<any>> -> memref<1x32xf32, #tpu.memory_space<any>>
      %c0_i32_19 = arith.constant 0 : i32
      %22 = tpu.memref_slice %arg3[%5, %c0_i32_19] : memref<16x32xf32, #tpu.memory_space<vmem>> -> memref<1x32xf32, #tpu.memory_space<vmem>>
      %23 = tpu.memref_slice %arg4[%20] : memref<8x!tpu.dma_semaphore, #tpu.memory_space<semaphore_mem>> -> memref<1x!tpu.dma_semaphore, #tpu.memory_space<semaphore_mem>>
      %24 = tpu.memref_squeeze %23 : memref<1x!tpu.dma_semaphore, #tpu.memory_space<semaphore_mem>> -> memref<!tpu.dma_semaphore, #tpu.memory_space<semaphore_mem>>
      tpu.enqueue_dma source(%21 : memref<1x32xf32, #tpu.memory_space<any>>) target(%22 : memref<1x32xf32, #tpu.memory_space<vmem>>) target_semaphore(%24 : memref<!tpu.dma_semaphore, #tpu.memory_space<semaphore_mem>>)
    }
    %c8_i32_0 = arith.constant 8 : i32
    %c0_i32_1 = arith.constant 0 : i32
    %c8_i32_2 = arith.constant 8 : i32
    %2 = arith.addi %c0_i32_1, %c8_i32_2 : i32
    %c1_i32_3 = arith.constant 1 : i32
    scf.for %arg5 = %c0_i32_1 to %2 step %c1_i32_3  : i32 {
      %c1_i32_9 = arith.constant 1 : i32
      %4 = arith.muli %arg5, %c1_i32_9 : i32
      %c8_i32_10 = arith.constant 8 : i32
      %5 = arith.addi %c8_i32_10, %4 : i32
      %c8_i32_11 = arith.constant 8 : i32
      %6 = arith.subi %5, %c8_i32_11 : i32
      %c8_i32_12 = arith.constant 8 : i32
      %c0_i32_13 = arith.constant 0 : i32
      %7 = arith.cmpi eq, %c8_i32_12, %c0_i32_13 : i32
      %c1_i32_14 = arith.constant 1 : i32
      %8 = arith.select %7, %c1_i32_14, %c8_i32_12 : i32
      %9 = arith.remsi %6, %8 : i32
      %c0_i32_15 = arith.constant 0 : i32
      %10 = arith.cmpi ne, %9, %c0_i32_15 : i32
      %c0_i32_16 = arith.constant 0 : i32
      %11 = arith.cmpi slt, %9, %c0_i32_16 : i32
      %c0_i32_17 = arith.constant 0 : i32
      %12 = arith.cmpi slt, %8, %c0_i32_17 : i32
      %13 = arith.xori %11, %12 : i1
      %14 = arith.andi %13, %10 : i1
      %15 = arith.addi %9, %8 : i32
      %16 = arith.select %14, %15, %9 : i32
      %c0_i32_18 = arith.constant 0 : i32
      %c0_i32_19 = arith.constant 0 : i32
      %17 = tpu.memref_slice %arg2[%c0_i32_18, %c0_i32_19] : memref<101x32xf32, #tpu.memory_space<any>> -> memref<1x32xf32, #tpu.memory_space<any>>
      %c0_i32_20 = arith.constant 0 : i32
      %18 = tpu.memref_slice %arg3[%6, %c0_i32_20] : memref<16x32xf32, #tpu.memory_space<vmem>> -> memref<1x32xf32, #tpu.memory_space<vmem>>
      %19 = tpu.memref_slice %arg4[%16] : memref<8x!tpu.dma_semaphore, #tpu.memory_space<semaphore_mem>> -> memref<1x!tpu.dma_semaphore, #tpu.memory_space<semaphore_mem>>
      %20 = tpu.memref_squeeze %19 : memref<1x!tpu.dma_semaphore, #tpu.memory_space<semaphore_mem>> -> memref<!tpu.dma_semaphore, #tpu.memory_space<semaphore_mem>>
      tpu.wait_dma2 semaphore(%20 : memref<!tpu.dma_semaphore, #tpu.memory_space<semaphore_mem>>) src(%17 : memref<1x32xf32, #tpu.memory_space<any>>) dst(%18 : memref<1x32xf32, #tpu.memory_space<vmem>>)
      %21 = arith.addi %0, %5 : i32
      %22 = arith.index_cast %21 : i32 to index
      %23 = memref.load %arg1[%22] : memref<16xi32, #tpu.memory_space<smem>>
      %c0_i32_21 = arith.constant 0 : i32
      %c100_i32 = arith.constant 100 : i32
      %24 = arith.maxsi %c0_i32_21, %23 : i32
      %25 = arith.minsi %c100_i32, %24 : i32
      %c8_i32_22 = arith.constant 8 : i32
      %c0_i32_23 = arith.constant 0 : i32
      %26 = arith.cmpi eq, %c8_i32_22, %c0_i32_23 : i32
      %c1_i32_24 = arith.constant 1 : i32
      %27 = arith.select %26, %c1_i32_24, %c8_i32_22 : i32
      %28 = arith.remsi %5, %27 : i32
      %c0_i32_25 = arith.constant 0 : i32
      %29 = arith.cmpi ne, %28, %c0_i32_25 : i32
      %c0_i32_26 = arith.constant 0 : i32
      %30 = arith.cmpi slt, %28, %c0_i32_26 : i32
      %c0_i32_27 = arith.constant 0 : i32
      %31 = arith.cmpi slt, %27, %c0_i32_27 : i32
      %32 = arith.xori %30, %31 : i1
      %33 = arith.andi %32, %29 : i1
      %34 = arith.addi %28, %27 : i32
      %35 = arith.select %33, %34, %28 : i32
      %c0_i32_28 = arith.constant 0 : i32
      %36 = tpu.memref_slice %arg2[%25, %c0_i32_28] : memref<101x32xf32, #tpu.memory_space<any>> -> memref<1x32xf32, #tpu.memory_space<any>>
      %c0_i32_29 = arith.constant 0 : i32
      %37 = tpu.memref_slice %arg3[%5, %c0_i32_29] : memref<16x32xf32, #tpu.memory_space<vmem>> -> memref<1x32xf32, #tpu.memory_space<vmem>>
      %38 = tpu.memref_slice %arg4[%35] : memref<8x!tpu.dma_semaphore, #tpu.memory_space<semaphore_mem>> -> memref<1x!tpu.dma_semaphore, #tpu.memory_space<semaphore_mem>>
      %39 = tpu.memref_squeeze %38 : memref<1x!tpu.dma_semaphore, #tpu.memory_space<semaphore_mem>> -> memref<!tpu.dma_semaphore, #tpu.memory_space<semaphore_mem>>
      tpu.enqueue_dma source(%36 : memref<1x32xf32, #tpu.memory_space<any>>) target(%37 : memref<1x32xf32, #tpu.memory_space<vmem>>) target_semaphore(%39 : memref<!tpu.dma_semaphore, #tpu.memory_space<semaphore_mem>>)
    }
    %c8_i32_4 = arith.constant 8 : i32
    %c0_i32_5 = arith.constant 0 : i32
    %c8_i32_6 = arith.constant 8 : i32
    %3 = arith.addi %c0_i32_5, %c8_i32_6 : i32
    %c1_i32_7 = arith.constant 1 : i32
    scf.for %arg5 = %c0_i32_5 to %3 step %c1_i32_7  : i32 {
      %c1_i32_9 = arith.constant 1 : i32
      %4 = arith.muli %arg5, %c1_i32_9 : i32
      %c8_i32_10 = arith.constant 8 : i32
      %5 = arith.addi %c8_i32_10, %4 : i32
      %c8_i32_11 = arith.constant 8 : i32
      %c0_i32_12 = arith.constant 0 : i32
      %6 = arith.cmpi eq, %c8_i32_11, %c0_i32_12 : i32
      %c1_i32_13 = arith.constant 1 : i32
      %7 = arith.select %6, %c1_i32_13, %c8_i32_11 : i32
      %8 = arith.remsi %5, %7 : i32
      %c0_i32_14 = arith.constant 0 : i32
      %9 = arith.cmpi ne, %8, %c0_i32_14 : i32
      %c0_i32_15 = arith.constant 0 : i32
      %10 = arith.cmpi slt, %8, %c0_i32_15 : i32
      %c0_i32_16 = arith.constant 0 : i32
      %11 = arith.cmpi slt, %7, %c0_i32_16 : i32
      %12 = arith.xori %10, %11 : i1
      %13 = arith.andi %12, %9 : i1
      %14 = arith.addi %8, %7 : i32
      %15 = arith.select %13, %14, %8 : i32
      %c0_i32_17 = arith.constant 0 : i32
      %c0_i32_18 = arith.constant 0 : i32
      %16 = tpu.memref_slice %arg2[%c0_i32_17, %c0_i32_18] : memref<101x32xf32, #tpu.memory_space<any>> -> memref<1x32xf32, #tpu.memory_space<any>>
      %c0_i32_19 = arith.constant 0 : i32
      %17 = tpu.memref_slice %arg3[%5, %c0_i32_19] : memref<16x32xf32, #tpu.memory_space<vmem>> -> memref<1x32xf32, #tpu.memory_space<vmem>>
      %18 = tpu.memref_slice %arg4[%15] : memref<8x!tpu.dma_semaphore, #tpu.memory_space<semaphore_mem>> -> memref<1x!tpu.dma_semaphore, #tpu.memory_space<semaphore_mem>>
      %19 = tpu.memref_squeeze %18 : memref<1x!tpu.dma_semaphore, #tpu.memory_space<semaphore_mem>> -> memref<!tpu.dma_semaphore, #tpu.memory_space<semaphore_mem>>
      tpu.wait_dma2 semaphore(%19 : memref<!tpu.dma_semaphore, #tpu.memory_space<semaphore_mem>>) src(%16 : memref<1x32xf32, #tpu.memory_space<any>>) dst(%17 : memref<1x32xf32, #tpu.memory_space<vmem>>)
    }
    %c8_i32_8 = arith.constant 8 : i32
    return
  }
  func.func @transform_1(%arg0: i32, %arg1: memref<16xi32, #tpu.memory_space<smem>>) -> (i32, i32) {
    %c0_i32 = arith.constant 0 : i32
    %c0_i32_0 = arith.constant 0 : i32
    return %arg0, %c0_i32 : i32, i32
  }
}

</mosaic_0001>

<bundles_post_ra>
// kernel: tpu_custom_call.1
= control target key start
LH: loop header
LB: loop body
LE: loop exit
PB: predicated region body
PF: predicated region fallthrough
CT: control target
= control target key end

     0   :  { %s415_s12 = smov [#allocation4]   ;;  %s459_s0 = inlined_call_operand.vmem [shape: s32[16], index: 0, kind: input, shape index: {}]   ;;  %s460_s1 = inlined_call_operand.vmem [shape: f32[101,32], index: 1, kind: input, shape index: {}]   ;;  %s461_s2 = inlined_call_operand.hbm [shape: f32[16,32], index: 2, kind: output, shape index: {}]  }
   0x1   :  { %s8_s11 = sshll.u32 %s459_s0, 4  ;;  %s9_s11 = int_to_ptr.vmem [resolvable:$true] %s8_s11 }
   0x2   :  { %11 = dma.vmem_to_smem %s9_s11, 16, %s415_s12, [#allocation3] }
   0x3   :  { %395 = dma.done.wait [#allocation3], 16 }
   0x4   :  { %396 = vsyncadd [#allocation3], 4294967280 }
   0x5   :  { %14 = sfence }
   0x6   :  { %15 = vsyncpa [#allocation6], 0  ;;  %s403_s13 = smov 0  }
   0x7 LB: > { %s24_s14 = sld [smem:[#allocation4 + %s405_s13]]  ;;  %p29_p0 = scmp.lt.s32.totalorder %s405_s13, 0  ;;  %s405_s13 = sphi %s403_s13, %s22_s13  }
   0x8   : > { %s30_s15 = ssub.s32 0, %s405_s13  ;;  %s42_s22 = scalar_lea.vmem [#allocation5], %s405_s13 }
   0x9   : > { %s289_s16 = smin.u32 %s405_s13, %s30_s15 }
   0xa   : > { %s32_s17 = sand.u32 7, %s289_s16  }
   0xb   : > { %s33_s18 = ssub.s32 0, %s32_s17 }
   0xc   : > { %s463_s18 = smov (!%p29_p0, %s33_s18), %s32_s17 }
   0xd   : > { %p25_p1 = scmp.gt.s32.totalorder %s24_s14, 0  ;;  %p284_p2 = scmp.lt.s32.totalorder %s24_s14, 100 }
   0xe   : > { %p291_p3 = scmp.lt.s32.totalorder %s463_s18, 0  ;;  %s39_s0 = sadd.s32 8, %s463_s18 }
   0xf   : > { %s465_s14 = smov (!%p25_p1, %s24_s14), 0 }
  0x10   : > { %s467_s0 = smov (!%p291_p3, %s39_s0), %s463_s18  ;;  %s469_s14 = smov (!%p284_p2, %s465_s14), 100 }
  0x11   : > { %s41_s21 = scalar_lea.vmem %s460_s1, %s469_s14  ;;  %s43_s23 = scalar_lea.sflag [#allocation2], %s467_s0 }
  0x12   : > { %v58_v0 = vld [vmem:[%s41_s21] sm:$0x1] }
  0x13   : > { %59 = vst [vmem:[%s42_s22] sm:$0x1] %v58_v0 }
  0x14   : > { %77 = vsyncadd %s43_s23, 16  ;;  %s22_s13 = sadd.s32 1, %s405_s13  }
  0x15   : > { %p19_p4 = scmp.ge.s32.totalorder %s22_s13, 8  }
  0x16   :  { %s440_s24 = smov (%p19_p4), 0  }
  0x17   :  { %21 = sbr.rel (!%p19_p4) target bundleno = 7 (0x7), region = 124 }
  0x1c LB: > { %s84_s25 = sadd.s32 8, %s409_s24  ;;  %p85_p5 = scmp.lt.s32.totalorder %s409_s24, 0  ;;  %s409_s24 = sphi %s440_s24, %s83_s24  }
  0x1d   : > { %s86_s26 = ssub.s32 0, %s409_s24 }
  0x1e   : > { %s292_s27 = smin.u32 %s409_s24, %s86_s26 }
  0x1f   : > { %s88_s28 = sand.u32 7, %s292_s27  }
  0x20   : > { %s89_s29 = ssub.s32 0, %s88_s28 }
  0x21   : > { %s471_s29 = smov (!%p85_p5, %s89_s29), %s88_s28 }
  0x22   : > { %p294_p6 = scmp.lt.s32.totalorder %s471_s29, 0  ;;  %s95_s30 = sadd.s32 8, %s471_s29 }
  0x24   : > { %s473_s30 = smov (!%p294_p6, %s95_s30), %s471_s29 }
  0x25   : > { %s97_s3 = scalar_lea.sflag [#allocation2], %s473_s30 }
  0x26   : > { %397 = dma.done.wait %s97_s3, 16 }
  0x27   : > { %398 = vsyncadd %s97_s3, 4294967280  ;;  %p107_p7 = scmp.lt.s32.totalorder %s84_s25, 0  ;;  %s108_s4 = ssub.s32 0, %s84_s25 }
  0x28   : > { %s102_s5 = sld [smem:[#allocation4 + %s84_s25]]  ;;  %s300_s6 = smin.u32 %s108_s4, %s84_s25 }
  0x29   : > { %s110_s7 = sand.u32 7, %s300_s6   ;;  %s257_s13 = scalar_lea.vmem [#allocation5], %s409_s24 }
  0x2a   : > { %s111_s8 = ssub.s32 0, %s110_s7 }
  0x2b   : > { %s475_s8 = smov (!%p107_p7, %s111_s8), %s110_s7 }
  0x2c   : > { %p302_p8 = scmp.lt.s32.totalorder %s475_s8, 0  ;;  %s117_s9 = sadd.s32 8, %s475_s8 }
  0x2e   : > { %p103_p9 = scmp.gt.s32.totalorder %s102_s5, 0  ;;  %p295_p10 = scmp.lt.s32.totalorder %s102_s5, 100 }
  0x2f   : > { %s477_s9 = smov (!%p302_p8, %s117_s9), %s475_s8 }
  0x30   : > { %s479_s5 = smov (!%p103_p9, %s102_s5), 0  ;;  %s121_s14 = scalar_lea.sflag [#allocation2], %s477_s9 }
  0x31   : > { %s481_s5 = smov (!%p295_p10, %s479_s5), 100 }
  0x32   : > { %s119_s12 = scalar_lea.vmem %s460_s1, %s481_s5 }
  0x33   : > { %v136_v1 = vld [vmem:[%s119_s12] sm:$0x1] }
  0x34   : > { %303 = vst [vmem:[%s257_s13 + $0x8] sm:$0x1] %v136_v1 }
  0x35   : > { %155 = vsyncadd %s121_s14, 16  ;;  %s83_s24 = sadd.s32 1, %s409_s24  }
  0x36   : > { %p80_p11 = scmp.ge.s32.totalorder %s83_s24, 8  }
  0x37   :  { %s411_s15 = smov (%p80_p11), 0  }
  0x38   :  { %82 = sbr.rel (!%p80_p11) target bundleno = 28 (0x1c), region = 135 }
  0x3d LB: > { %s162_s16 = sadd.s32 8, %s413_s15  ;;  %s413_s15 = sphi %s411_s15, %s161_s15  }
  0x3e   : > { %p163_p12 = scmp.lt.s32.totalorder %s162_s16, 0  ;;  %s164_s17 = ssub.s32 0, %s162_s16 }
  0x3f   : > { %s304_s18 = smin.u32 %s164_s17, %s162_s16 }
  0x40   : > { %s166_s0 = sand.u32 7, %s304_s18  }
  0x41   : > { %s167_s19 = ssub.s32 0, %s166_s0 }
  0x42   : > { %s483_s19 = smov (!%p163_p12, %s167_s19), %s166_s0 }
  0x43   : > { %p306_p13 = scmp.lt.s32.totalorder %s483_s19, 0  ;;  %s173_s20 = sadd.s32 8, %s483_s19 }
  0x45   : > { %s485_s20 = smov (!%p306_p13, %s173_s20), %s483_s19 }
  0x46   : > { %s175_s21 = scalar_lea.sflag [#allocation2], %s485_s20 }
  0x47   : > { %399 = dma.done.wait %s175_s21, 16 }
  0x48   : > { %400 = vsyncadd %s175_s21, 4294967280  ;;  %s161_s15 = sadd.s32 1, %s413_s15  }
  0x49   : > { %p158_p0 = scmp.ge.s32.totalorder %s161_s15, 8  }
  0x4a   :  { %s185_s23 = sshll.u32 (%p158_p0), %s461_s2, 4  ;;  %s416_s24 = smov (%p158_p0), [#allocation5]   ;;  %s186_s23 = int_to_ptr.hbm [resolvable:$true] %s185_s23 }
  0x4b   :  { %160 = sbr.rel (!%p158_p0) target bundleno = 61 (0x3d), region = 146  ;;  %s183_s25 = sshll.u32 (%p158_p0), %s416_s24, 4  ;;  %s184_s25 = int_to_ptr.vmem [resolvable:$true] %s183_s25 }
  0x4c   :  { %s417_s26 = smov (%p158_p0), 128   ;;  %s418_s27 = smov (%p158_p0), 8  }
  0x4d   :  { %191 = dma.vmem_to_hbm [thread:$0]  (%p158_p0), %s184_s25, 256, %s186_s23, [#allocation6], %s417_s26, %s417_s26, %s418_s27  }
  0x50   :  { %401 = dma.done.wait [#allocation6], 256  }
  0x51   :  { %402 = vsyncadd [#allocation6], 4294967040 }
  0x52   :  { %196 = vsyncpa [#allocation6], 1 }
  0x53   :  { %197 = vsyncmov [#allocation2] }
  0x56   :  { %s198_s28 = vpop.sfrf %197 }
  0x57   :  { %p307_p1 = scmp.ne.s32.totalorder %s198_s28, 0 }
  0x59   :  { %202 = shalt.err (%p307_p1)  }
  0x5a   :  { %204 = vsyncmov [#allocation2 + $0x1] }
  0x5d   :  { %s205_s29 = vpop.sfrf %204 }
  0x5e   :  { %p308_p2 = scmp.ne.s32.totalorder %s205_s29, 0 }
  0x60   :  { %209 = shalt.err (%p308_p2)  }
  0x61   :  { %211 = vsyncmov [#allocation2 + $0x2] }
  0x64   :  { %s212_s2 = vpop.sfrf %211 }
  0x65   :  { %p309_p3 = scmp.ne.s32.totalorder %s212_s2, 0 }
  0x67   :  { %216 = shalt.err (%p309_p3)  }
  0x68   :  { %218 = vsyncmov [#allocation2 + $0x3] }
  0x6b   :  { %s219_s30 = vpop.sfrf %218 }
  0x6c   :  { %p310_p4 = scmp.ne.s32.totalorder %s219_s30, 0 }
  0x6e   :  { %223 = shalt.err (%p310_p4)  }
  0x6f   :  { %225 = vsyncmov [#allocation2 + $0x4] }
  0x72   :  { %s226_s3 = vpop.sfrf %225 }
  0x73   :  { %p311_p5 = scmp.ne.s32.totalorder %s226_s3, 0 }
  0x75   :  { %230 = shalt.err (%p311_p5)  }
  0x76   :  { %232 = vsyncmov [#allocation2 + $0x5] }
  0x79   :  { %s233_s4 = vpop.sfrf %232 }
  0x7a   :  { %p312_p6 = scmp.ne.s32.totalorder %s233_s4, 0 }
  0x7c   :  { %237 = shalt.err (%p312_p6)  }
  0x7d   :  { %239 = vsyncmov [#allocation2 + $0x6] }
  0x80   :  { %s240_s5 = vpop.sfrf %239 }
  0x81   :  { %p313_p7 = scmp.ne.s32.totalorder %s240_s5, 0 }
  0x83   :  { %244 = shalt.err (%p313_p7)  }
  0x84   :  { %246 = vsyncmov [#allocation2 + $0x7] }
  0x87   :  { %s247_s6 = vpop.sfrf %246 }
  0x88   :  { %p314_p8 = scmp.ne.s32.totalorder %s247_s6, 0 }
  0x8a   :  { %251 = shalt.err (%p314_p8)  }

</bundles_post_ra>
